<compile_context>
chip_gen: v7x
topology: tpu7x:2x2x1
jax: 0.10.0
libtpu: 0.0.40
codegen_flags: <defaults>
</compile_context>

<pallas_src>
import jax
import jax.numpy as jnp
from jax.experimental import pallas as pl
from jax.experimental.pallas import tpu as pltpu


def _round_up(x, m):
    return (x + m - 1) // m * m


def _orthogonal(key, shape, gain=1.0, dtype=jnp.float32):
    """Deterministic orthogonal init (same semantics as nn.init.orthogonal_)."""
    rows, cols = shape
    n = max(rows, cols)
    a = jax.random.normal(key, (n, n), dtype=jnp.float32)
    q, r = jnp.linalg.qr(a)
    d = jnp.diag(r)
    q = q * jnp.where(d >= 0, 1.0, -1.0)[None, :]   # robust sign correction
    return (gain * q[:rows, :cols]).astype(dtype)


# ----------------------------------------------------------------------------
# Kernel: both Q-heads fused, batch-tiled.
# ----------------------------------------------------------------------------
def critic_qheads_kernel(obs_ref, act_ref,
                         w1o_ref, w1a_ref, b1_ref, w2_ref, b2_ref, w3_ref, b3_ref,
                         q1_ref, q2_ref):
    hp = w2_ref.shape[-1]                       # static padded hidden width per head
    obs = obs_ref[...]
    act = act_ref[...]

    # Layer 1 (obs_dim + act_dim -> hidden) for BOTH heads in one lane-concatenated
    # matmul pair; the concat(obs, action) is folded into two dots (no HBM concat).
    h1 = (jnp.dot(obs, w1o_ref[...], preferred_element_type=jnp.float32)
          + jnp.dot(act, w1a_ref[...], preferred_element_type=jnp.float32)
          + b1_ref[...].astype(jnp.float32))
    h1 = jnp.maximum(h1, 0.0)                   # (TB, 2*HP), padded lanes stay 0

    for q, out_ref in enumerate((q1_ref, q2_ref)):      # static 2-way unroll
        hq = h1[:, q * hp:(q + 1) * hp]                  # 128-lane-aligned slice

        # Linear(hidden -> hidden) + ReLU (operands back to param dtype for MXU).
        h2 = (jnp.dot(hq.astype(w2_ref.dtype), w2_ref[q],
                      preferred_element_type=jnp.float32)
              + b2_ref[q].astype(jnp.float32))
        h2 = jnp.maximum(h2, 0.0)

        # Linear(hidden -> 1) as VPU mul + lane reduce (avoids an N=1 MXU pass).
        qv = (jnp.sum(h2 * w3_ref[q].astype(jnp.float32), axis=-1, keepdims=True)
              + b3_ref[q].astype(jnp.float32))
        out_ref[...] = qv.astype(out_ref.dtype)


# ----------------------------------------------------------------------------
# Wrapper
# ----------------------------------------------------------------------------
def critic_forward(x, action, padded_params, *, block_b=512, interpret=False):
    """x: (B, feat_dim) encoder output, action: (B, act_dim). Returns (Q1, Q2)."""
    w1o, w1a, b1, w2, b2, w3, b3 = padded_params
    B, obs_dim = x.shape
    act_dim = action.shape[1]
    n_heads, hp = w2.shape[0], w2.shape[-1]

    # Batch tile: as large as sensible, multiple of 8 sublanes.
    tb = min(block_b, _round_up(B, 8))
    bp = _round_up(B, tb)
    if bp != B:
        x = jnp.pad(x, ((0, bp - B), (0, 0)))
        action = jnp.pad(action, ((0, bp - B), (0, 0)))
    grid = (bp // tb,)

    row_spec = lambda d: pl.BlockSpec((tb, d), lambda i: (i, 0))
    resident = lambda a: pl.BlockSpec(a.shape, lambda i, n=a.ndim: (0,) * n)

    # VMEM budget: double-buffered row tiles + resident weights + f32 intermediates.
    itemsize = x.dtype.itemsize
    weight_bytes = sum(int(a.size) * a.dtype.itemsize for a in padded_params)
    vmem_est = (2 * tb * (obs_dim + act_dim) * itemsize      # input buffers (x2)
                + 2 * n_heads * tb * itemsize                # output buffers (x2 heads)
                + weight_bytes
                + (2 * n_heads + 2) * tb * hp * 4)           # f32 intermediates
    vmem_limit = int(min(64 << 20, max(16 << 20, 2 * vmem_est)))

    q1, q2 = pl.pallas_call(
        critic_qheads_kernel,
        grid=grid,
        in_specs=[row_spec(obs_dim), row_spec(act_dim)]
                 + [resident(a) for a in padded_params],
        out_specs=(row_spec(1), row_spec(1)),
        out_shape=(jax.ShapeDtypeStruct((bp, 1), x.dtype),
                   jax.ShapeDtypeStruct((bp, 1), x.dtype)),
        compiler_params=pltpu.CompilerParams(
            dimension_semantics=("parallel",),
            vmem_limit_bytes=vmem_limit),
        interpret=interpret,
    )(x, action, w1o, w1a, b1, w2, b2, w3, b3)
    return q1[:B], q2[:B]


# ----------------------------------------------------------------------------
# Parameter init (matches nn.Linear + orthogonal_init) and padding/stacking.
# ----------------------------------------------------------------------------
def init_qfunction(key, in_dim, hidden_dim, dtype=jnp.float32):
    k1, k2, k3 = jax.random.split(key, 3)
    # nn.Linear weight is (out, in); store transposed (in, out) for x @ W.
    w1 = _orthogonal(k1, (hidden_dim, in_dim), dtype=dtype).T      # (in, hidden)
    b1 = jnp.zeros((1, hidden_dim), dtype)
    w2 = _orthogonal(k2, (hidden_dim, hidden_dim), dtype=dtype).T  # (hidden, hidden)
    b2 = jnp.zeros((1, hidden_dim), dtype)
    w3 = _orthogonal(k3, (1, hidden_dim), dtype=dtype)             # (1, hidden) row
    b3 = jnp.zeros((1, 1), dtype)
    return (w1, b1, w2, b2, w3, b3)


def prepare_params(q_params_list, obs_dim):
    """Pad hidden to a 128-lane multiple; concat layer-1 across heads along lanes,
    stack the remaining per-head weights along a leading head axis."""
    hidden = q_params_list[0][0].shape[1]
    ph = _round_up(hidden, 128) - hidden
    w1o_c, w1a_c, b1_c = [], [], []
    w2s, b2s, w3s, b3s = [], [], [], []
    for (w1, b1, w2, b2, w3, b3) in q_params_list:
        w1p = jnp.pad(w1, ((0, 0), (0, ph)))            # (in, HP)
        w1o_c.append(w1p[:obs_dim])
        w1a_c.append(w1p[obs_dim:])
        b1_c.append(jnp.pad(b1, ((0, 0), (0, ph))))
        w2s.append(jnp.pad(w2, ((0, ph), (0, ph))))
        b2s.append(jnp.pad(b2, ((0, 0), (0, ph))))
        w3s.append(jnp.pad(w3, ((0, 0), (0, ph))))
        b3s.append(b3)
    return (jnp.concatenate(w1o_c, axis=1),             # (obs_dim, n_heads*HP)
            jnp.concatenate(w1a_c, axis=1),             # (act_dim, n_heads*HP)
            jnp.concatenate(b1_c, axis=1),               # (1, n_heads*HP)
            jnp.stack(w2s, axis=0),                      # (n_heads, HP, HP)
            jnp.stack(b2s, axis=0),                      # (n_heads, 1, HP)
            jnp.stack(w3s, axis=0),                      # (n_heads, 1, HP)
            jnp.stack(b3s, axis=0))                      # (n_heads, 1, 1)


def qfunction_ref(x, action, params):
    """Pure-JAX reference of one QFunction (unpadded weights)."""
    w1, b1, w2, b2, w3, b3 = params
    h = jnp.concatenate([x, action], axis=1)
    h = jnp.maximum(h @ w1 + b1, 0.0)
    h = jnp.maximum(h @ w2 + b2, 0.0)
    return h @ w3.T + b3


if __name__ == "__main__":
    key = jax.random.PRNGKey(0)
    k_x, k_a, k_q1, k_q2 = jax.random.split(key, 4)

    # TODO(synk): the encoder submodule has no definition in the spec; the kernel
    # consumes its output features `x` directly (Critic.Q1/Q2 path only).
    batch, feat_dim, action_dim, hidden_dim = 8, 50, 6, 64
    x = jax.random.normal(k_x, (batch, feat_dim), dtype=jnp.float32)
    action = jax.random.normal(k_a, (batch, action_dim), dtype=jnp.float32)

    q1_params = init_qfunction(k_q1, feat_dim + action_dim, hidden_dim)
    q2_params = init_qfunction(k_q2, feat_dim + action_dim, hidden_dim)
    padded = prepare_params([q1_params, q2_params], feat_dim)

    q1, q2 = jax.block_until_ready(critic_forward(x, action, padded))

    r1 = qfunction_ref(x, action, q1_params)
    r2 = qfunction_ref(x, action, q2_params)

    assert q1.shape == (batch, 1) and q2.shape == (batch, 1)
    assert jnp.allclose(q1, r1, atol=1e-4, rtol=1e-4)
    assert jnp.allclose(q2, r2, atol=1e-4, rtol=1e-4)
    print("KERNEL_OK")
</pallas_src>

<mosaic_0001>
module attributes {stable_mosaic.version = 11 : i64} {
  func.func @critic_qheads_kernel(%arg0: i32, %arg1: memref<8x50xf32, #tpu.memory_space<vmem>>, %arg2: memref<8x6xf32, #tpu.memory_space<vmem>>, %arg3: memref<50x256xf32, #tpu.memory_space<vmem>>, %arg4: memref<6x256xf32, #tpu.memory_space<vmem>>, %arg5: memref<1x256xf32, #tpu.memory_space<vmem>>, %arg6: memref<2x128x128xf32, #tpu.memory_space<vmem>>, %arg7: memref<2x1x128xf32, #tpu.memory_space<vmem>>, %arg8: memref<2x1x128xf32, #tpu.memory_space<vmem>>, %arg9: memref<2x1x1xf32, #tpu.memory_space<vmem>>, %arg10: memref<8x1xf32, #tpu.memory_space<vmem>>, %arg11: memref<8x1xf32, #tpu.memory_space<vmem>>) attributes {dimension_semantics = [#tpu.dimension_semantics<parallel>], iteration_bounds = array<i64: 1>, scalar_prefetch = 0 : i64, scratch_operands = 0 : i64, tpu.core_type = #tpu.core_type<tc>, window_params = [{transform_indices = @transform_0, window_bounds = array<i64: 8, 50>}, {transform_indices = @transform_1, window_bounds = array<i64: 8, 6>}, {pipeline_mode = #tpu.pipeline_mode<synchronous>, transform_indices = @transform_2, window_bounds = array<i64: 50, 256>}, {pipeline_mode = #tpu.pipeline_mode<synchronous>, transform_indices = @transform_3, window_bounds = array<i64: 6, 256>}, {pipeline_mode = #tpu.pipeline_mode<synchronous>, transform_indices = @transform_4, window_bounds = array<i64: 1, 256>}, {pipeline_mode = #tpu.pipeline_mode<synchronous>, transform_indices = @transform_5, window_bounds = array<i64: 2, 128, 128>}, {pipeline_mode = #tpu.pipeline_mode<synchronous>, transform_indices = @transform_6, window_bounds = array<i64: 2, 1, 128>}, {pipeline_mode = #tpu.pipeline_mode<synchronous>, transform_indices = @transform_7, window_bounds = array<i64: 2, 1, 128>}, {pipeline_mode = #tpu.pipeline_mode<synchronous>, transform_indices = @transform_8, window_bounds = array<i64: 2, 1, 1>}, {transform_indices = @transform_9, window_bounds = array<i64: 8, 1>}, {transform_indices = @transform_10, window_bounds = array<i64: 8, 1>}]} {
    %c0 = arith.constant 0 : index
    %c0_0 = arith.constant 0 : index
    %0 = vector.load %arg1[%c0, %c0_0] : memref<8x50xf32, #tpu.memory_space<vmem>>, vector<8x50xf32>
    %c0_1 = arith.constant 0 : index
    %c0_2 = arith.constant 0 : index
    %1 = vector.load %arg2[%c0_1, %c0_2] : memref<8x6xf32, #tpu.memory_space<vmem>>, vector<8x6xf32>
    %c0_3 = arith.constant 0 : index
    %c0_4 = arith.constant 0 : index
    %2 = vector.load %arg3[%c0_3, %c0_4] : memref<50x256xf32, #tpu.memory_space<vmem>>, vector<50x256xf32>
    %cst = arith.constant dense<0.000000e+00> : vector<8x256xf32>
    %3 = tpu.matmul %0, %2, %cst {dimension_numbers = #tpu.dot_dimension_numbers<[1], [0], [0], [1], [0, 0, 1, 1], [], []>} : vector<8x50xf32>, vector<50x256xf32>, vector<8x256xf32> -> vector<8x256xf32>
    %c0_5 = arith.constant 0 : index
    %c0_6 = arith.constant 0 : index
    %4 = vector.load %arg4[%c0_5, %c0_6] : memref<6x256xf32, #tpu.memory_space<vmem>>, vector<6x256xf32>
    %cst_7 = arith.constant dense<0.000000e+00> : vector<8x256xf32>
    %5 = tpu.matmul %1, %4, %cst_7 {dimension_numbers = #tpu.dot_dimension_numbers<[1], [0], [0], [1], [0, 0, 1, 1], [], []>} : vector<8x6xf32>, vector<6x256xf32>, vector<8x256xf32> -> vector<8x256xf32>
    %6 = arith.addf %3, %5 : vector<8x256xf32>
    %c0_8 = arith.constant 0 : index
    %c0_9 = arith.constant 0 : index
    %7 = vector.load %arg5[%c0_8, %c0_9] : memref<1x256xf32, #tpu.memory_space<vmem>>, vector<1x256xf32>
    %8 = vector.broadcast %7 : vector<1x256xf32> to vector<8x256xf32>
    %9 = arith.addf %6, %8 : vector<8x256xf32>
    %cst_10 = arith.constant 0.000000e+00 : f32
    %10 = vector.broadcast %cst_10 : f32 to vector<8x256xf32>
    %11 = arith.maximumf %9, %10 : vector<8x256xf32>
    %12 = vector.extract_strided_slice %11 {offsets = [0, 0], sizes = [8, 128], strides = [1, 1]} : vector<8x256xf32> to vector<8x128xf32>
    %c0_11 = arith.constant 0 : index
    %c0_12 = arith.constant 0 : index
    %c0_13 = arith.constant 0 : index
    %13 = vector.load %arg6[%c0_11, %c0_12, %c0_13] : memref<2x128x128xf32, #tpu.memory_space<vmem>>, vector<1x128x128xf32>
    %14 = vector.shape_cast %13 : vector<1x128x128xf32> to vector<128x128xf32>
    %cst_14 = arith.constant dense<0.000000e+00> : vector<8x128xf32>
    %15 = tpu.matmul %12, %14, %cst_14 {dimension_numbers = #tpu.dot_dimension_numbers<[1], [0], [0], [1], [0, 0, 1, 1], [], []>} : vector<8x128xf32>, vector<128x128xf32>, vector<8x128xf32> -> vector<8x128xf32>
    %c0_15 = arith.constant 0 : index
    %c0_16 = arith.constant 0 : index
    %c0_17 = arith.constant 0 : index
    %16 = vector.load %arg7[%c0_15, %c0_16, %c0_17] : memref<2x1x128xf32, #tpu.memory_space<vmem>>, vector<1x1x128xf32>
    %17 = vector.shape_cast %16 : vector<1x1x128xf32> to vector<1x128xf32>
    %18 = vector.broadcast %17 : vector<1x128xf32> to vector<8x128xf32>
    %19 = arith.addf %15, %18 : vector<8x128xf32>
    %cst_18 = arith.constant 0.000000e+00 : f32
    %20 = vector.broadcast %cst_18 : f32 to vector<8x128xf32>
    %21 = arith.maximumf %19, %20 : vector<8x128xf32>
    %c0_19 = arith.constant 0 : index
    %c0_20 = arith.constant 0 : index
    %c0_21 = arith.constant 0 : index
    %22 = vector.load %arg8[%c0_19, %c0_20, %c0_21] : memref<2x1x128xf32, #tpu.memory_space<vmem>>, vector<1x1x128xf32>
    %23 = vector.shape_cast %22 : vector<1x1x128xf32> to vector<1x128xf32>
    %24 = vector.broadcast %23 : vector<1x128xf32> to vector<8x128xf32>
    %25 = arith.mulf %21, %24 : vector<8x128xf32>
    %cst_22 = arith.constant dense<0.000000e+00> : vector<8xf32>
    %26 = vector.multi_reduction <add>, %25, %cst_22 [1] : vector<8x128xf32> to vector<8xf32>
    %27 = vector.shape_cast %26 : vector<8xf32> to vector<8x1xf32>
    %c0_23 = arith.constant 0 : index
    %c0_24 = arith.constant 0 : index
    %c0_25 = arith.constant 0 : index
    %28 = vector.load %arg9[%c0_23, %c0_24, %c0_25] : memref<2x1x1xf32, #tpu.memory_space<vmem>>, vector<1x1x1xf32>
    %29 = vector.shape_cast %28 : vector<1x1x1xf32> to vector<1x1xf32>
    %30 = vector.broadcast %29 : vector<1x1xf32> to vector<8x1xf32>
    %31 = arith.addf %27, %30 : vector<8x1xf32>
    %c0_26 = arith.constant 0 : index
    %c0_27 = arith.constant 0 : index
    %32 = vector.load %arg10[%c0_26, %c0_27] : memref<8x1xf32, #tpu.memory_space<vmem>>, vector<8x1xf32>
    tpu.vector_store %arg10[%c0_26, %c0_27], %31 {strides = array<i32>} : memref<8x1xf32, #tpu.memory_space<vmem>>, vector<8x1xf32>,
    %33 = vector.extract_strided_slice %11 {offsets = [0, 128], sizes = [8, 128], strides = [1, 1]} : vector<8x256xf32> to vector<8x128xf32>
    %c1 = arith.constant 1 : index
    %c0_28 = arith.constant 0 : index
    %c0_29 = arith.constant 0 : index
    %34 = vector.load %arg6[%c1, %c0_28, %c0_29] : memref<2x128x128xf32, #tpu.memory_space<vmem>>, vector<1x128x128xf32>
    %35 = vector.shape_cast %34 : vector<1x128x128xf32> to vector<128x128xf32>
    %cst_30 = arith.constant dense<0.000000e+00> : vector<8x128xf32>
    %36 = tpu.matmul %33, %35, %cst_30 {dimension_numbers = #tpu.dot_dimension_numbers<[1], [0], [0], [1], [0, 0, 1, 1], [], []>} : vector<8x128xf32>, vector<128x128xf32>, vector<8x128xf32> -> vector<8x128xf32>
    %c1_31 = arith.constant 1 : index
    %c0_32 = arith.constant 0 : index
    %c0_33 = arith.constant 0 : index
    %37 = vector.load %arg7[%c1_31, %c0_32, %c0_33] : memref<2x1x128xf32, #tpu.memory_space<vmem>>, vector<1x1x128xf32>
    %38 = vector.shape_cast %37 : vector<1x1x128xf32> to vector<1x128xf32>
    %39 = vector.broadcast %38 : vector<1x128xf32> to vector<8x128xf32>
    %40 = arith.addf %36, %39 : vector<8x128xf32>
    %cst_34 = arith.constant 0.000000e+00 : f32
    %41 = vector.broadcast %cst_34 : f32 to vector<8x128xf32>
    %42 = arith.maximumf %40, %41 : vector<8x128xf32>
    %c1_35 = arith.constant 1 : index
    %c0_36 = arith.constant 0 : index
    %c0_37 = arith.constant 0 : index
    %43 = vector.load %arg8[%c1_35, %c0_36, %c0_37] : memref<2x1x128xf32, #tpu.memory_space<vmem>>, vector<1x1x128xf32>
    %44 = vector.shape_cast %43 : vector<1x1x128xf32> to vector<1x128xf32>
    %45 = vector.broadcast %44 : vector<1x128xf32> to vector<8x128xf32>
    %46 = arith.mulf %42, %45 : vector<8x128xf32>
    %cst_38 = arith.constant dense<0.000000e+00> : vector<8xf32>
    %47 = vector.multi_reduction <add>, %46, %cst_38 [1] : vector<8x128xf32> to vector<8xf32>
    %48 = vector.shape_cast %47 : vector<8xf32> to vector<8x1xf32>
    %c1_39 = arith.constant 1 : index
    %c0_40 = arith.constant 0 : index
    %c0_41 = arith.constant 0 : index
    %49 = vector.load %arg9[%c1_39, %c0_40, %c0_41] : memref<2x1x1xf32, #tpu.memory_space<vmem>>, vector<1x1x1xf32>
    %50 = vector.shape_cast %49 : vector<1x1x1xf32> to vector<1x1xf32>
    %51 = vector.broadcast %50 : vector<1x1xf32> to vector<8x1xf32>
    %52 = arith.addf %48, %51 : vector<8x1xf32>
    %c0_42 = arith.constant 0 : index
    %c0_43 = arith.constant 0 : index
    %53 = vector.load %arg11[%c0_42, %c0_43] : memref<8x1xf32, #tpu.memory_space<vmem>>, vector<8x1xf32>
    tpu.vector_store %arg11[%c0_42, %c0_43], %52 {strides = array<i32>} : memref<8x1xf32, #tpu.memory_space<vmem>>, vector<8x1xf32>,
    return
  }
  func.func @transform_0(%arg0: i32) -> (i32, i32) {
    %c0_i32 = arith.constant 0 : i32
    %c0_i32_0 = arith.constant 0 : i32
    return %arg0, %c0_i32 : i32, i32
  }
  func.func @transform_1(%arg0: i32) -> (i32, i32) {
    %c0_i32 = arith.constant 0 : i32
    %c0_i32_0 = arith.constant 0 : i32
    return %arg0, %c0_i32 : i32, i32
  }
  func.func @transform_2(%arg0: i32) -> (i32, i32) {
    %c0_i32 = arith.constant 0 : i32
    %c0_i32_0 = arith.constant 0 : i32
    %c0_i32_1 = arith.constant 0 : i32
    return %c0_i32, %c0_i32_0 : i32, i32
  }
  func.func @transform_3(%arg0: i32) -> (i32, i32) {
    %c0_i32 = arith.constant 0 : i32
    %c0_i32_0 = arith.constant 0 : i32
    %c0_i32_1 = arith.constant 0 : i32
    return %c0_i32, %c0_i32_0 : i32, i32
  }
  func.func @transform_4(%arg0: i32) -> (i32, i32) {
    %c0_i32 = arith.constant 0 : i32
    %c0_i32_0 = arith.constant 0 : i32
    %c0_i32_1 = arith.constant 0 : i32
    return %c0_i32, %c0_i32_0 : i32, i32
  }
  func.func @transform_5(%arg0: i32) -> (i32, i32, i32) {
    %c0_i32 = arith.constant 0 : i32
    %c0_i32_0 = arith.constant 0 : i32
    %c0_i32_1 = arith.constant 0 : i32
    %c0_i32_2 = arith.constant 0 : i32
    return %c0_i32, %c0_i32_0, %c0_i32_1 : i32, i32, i32
  }
  func.func @transform_6(%arg0: i32) -> (i32, i32, i32) {
    %c0_i32 = arith.constant 0 : i32
    %c0_i32_0 = arith.constant 0 : i32
    %c0_i32_1 = arith.constant 0 : i32
    %c0_i32_2 = arith.constant 0 : i32
    return %c0_i32, %c0_i32_0, %c0_i32_1 : i32, i32, i32
  }
  func.func @transform_7(%arg0: i32) -> (i32, i32, i32) {
    %c0_i32 = arith.constant 0 : i32
    %c0_i32_0 = arith.constant 0 : i32
    %c0_i32_1 = arith.constant 0 : i32
    %c0_i32_2 = arith.constant 0 : i32
    return %c0_i32, %c0_i32_0, %c0_i32_1 : i32, i32, i32
  }
  func.func @transform_8(%arg0: i32) -> (i32, i32, i32) {
    %c0_i32 = arith.constant 0 : i32
    %c0_i32_0 = arith.constant 0 : i32
    %c0_i32_1 = arith.constant 0 : i32
    %c0_i32_2 = arith.constant 0 : i32
    return %c0_i32, %c0_i32_0, %c0_i32_1 : i32, i32, i32
  }
  func.func @transform_9(%arg0: i32) -> (i32, i32) {
    %c0_i32 = arith.constant 0 : i32
    %c0_i32_0 = arith.constant 0 : i32
    return %arg0, %c0_i32 : i32, i32
  }
  func.func @transform_10(%arg0: i32) -> (i32, i32) {
    %c0_i32 = arith.constant 0 : i32
    %c0_i32_0 = arith.constant 0 : i32
    return %arg0, %c0_i32 : i32, i32
  }
}

</mosaic_0001>

<bundles_post_ra>
// kernel: tpu_custom_call.1
= control target key start
LH: loop header
LB: loop body
LE: loop exit
PB: predicated region body
PF: predicated region fallthrough
CT: control target
= control target key end

     0   :  { %16 = vsyncpa [#allocation3], 0  ;;  %s1028_s0 = inlined_call_operand.hbm [shape: f32[8,50], index: 0, kind: input, shape index: {}]   ;;  %s1029_s1 = inlined_call_operand.hbm [shape: f32[8,6], index: 1, kind: input, shape index: {}]   ;;  %s1030_s2 = inlined_call_operand.hbm [shape: f32[50,256], index: 2, kind: input, shape index: {}]   ;;  %s1031_s3 = inlined_call_operand.hbm [shape: f32[6,256], index: 3, kind: input, shape index: {}]   ;;  %s1032_s4 = inlined_call_operand.vmem [shape: f32[1,256], index: 4, kind: input, shape index: {}]   ;;  %s1033_s5 = inlined_call_operand.hbm [shape: f32[2,128,128], index: 5, kind: input, shape index: {}]   ;;  %s1034_s6 = inlined_call_operand.vmem [shape: f32[2,1,128], index: 6, kind: input, shape index: {}]   ;;  %s1035_s7 = inlined_call_operand.vmem [shape: f32[2,1,128], index: 7, kind: input, shape index: {}]   ;;  %s1036_s8 = inlined_call_operand.vmem [shape: f32[2,1,1], index: 8, kind: input, shape index: {}]   ;;  %s1037_s9 = inlined_call_operand.vmem [shape: f32[8,1], index: 9, kind: output, shape index: {0}]   ;;  %s1038_s10 = inlined_call_operand.vmem [shape: f32[8,1], index: 10, kind: output, shape index: {1}]  }
   0x1   :  { %17 = vsyncpa [#allocation5], 0 }
   0x2   :  { %18 = vsyncpa [#allocation8], 0  ;;  %s845_s13 = smov [#allocation4]   ;;  %s846_s15 = smov [#allocation7]  }
   0x3   :  { %s35_s14 = sshll.u32 %s845_s13, 4  ;;  %s57_s16 = sshll.u32 %s846_s15, 4  ;;  %s36_s14 = int_to_ptr.vmem [resolvable:$true] %s35_s14  ;;  %s58_s16 = int_to_ptr.vmem [resolvable:$true] %s57_s16 }
   0x4   :  { %s729_s19 = scalar_lea.hbm %s1029_s1, 128 }
   0x5   :  { %p730_p0 = scmp.ne.s32.totalorder %s1029_s1, %s729_s19  ;;  %p733_p1 = scmp.lt.u32.totalorder %s729_s19, %s1029_s1 }
   0x7   :  { %p735_p2 = pnand %p733_p1, %p730_p0 }
   0x9   :  { %738 = shalt.err (!%p735_p2)
}
   0xa   :  { %s739_s24 = scalar_lea.vmem %s36_s14, 128  ;;  %p744_p4 = scmp.lt.s32.totalorder %s36_s14, %s36_s14 }
   0xb   :  { %p740_p3 = scmp.ne.s32.totalorder %s36_s14, %s739_s24  ;;  %p745_p5 = scmp.lt.s32.totalorder %s739_s24, %s739_s24 }
   0xd   :  { %p746_p6 = por %p745_p5, %p744_p4 }
   0xf   :  { %p747_p7 = pnand %p746_p6, %p740_p3 }
  0x11   :  { %750 = shalt.err (!%p747_p7)
}
  0x12   :  { %38 = dma.hbm_to_vmem [thread:$0]  %s1029_s1, 128, %s36_s14, [#allocation5]  }
  0x13   :  { %s751_s29 = scalar_lea.hbm %s1031_s3, 256 }
  0x14   :  { %p752_p8 = scmp.ne.s32.totalorder %s1031_s3, %s751_s29  ;;  %p755_p9 = scmp.lt.u32.totalorder %s751_s29, %s1031_s3 }
  0x16   :  { %p757_p10 = pnand %p755_p9, %p752_p8 }
  0x18   :  { %760 = shalt.err (!%p757_p10)
}
  0x19   :  { %s761_s15 = scalar_lea.vmem %s58_s16, 256  ;;  %p766_p12 = scmp.lt.s32.totalorder %s58_s16, %s58_s16 }
  0x1a   :  { %p762_p11 = scmp.ne.s32.totalorder %s58_s16, %s761_s15  ;;  %p767_p13 = scmp.lt.s32.totalorder %s761_s15, %s761_s15 }
  0x1c   :  { %p768_p0 = por %p767_p13, %p766_p12 }
  0x1e   :  { %p769_p1 = pnand %p768_p0, %p762_p11 }
  0x20   :  { %772 = shalt.err (!%p769_p1)
}
  0x21   :  { %60 = dma.hbm_to_vmem [thread:$0]  %s1031_s3, 256, %s58_s16, [#allocation8]  }
  0x22   :  { %s847_s17 = smov [#allocation2]   ;;  %s848_s19 = smov [#allocation6]  }
  0x23   :  { %s25_s18 = sshll.u32 %s847_s17, 4  ;;  %s44_s20 = sshll.u32 %s848_s19, 4  ;;  %s26_s18 = int_to_ptr.vmem [resolvable:$true] %s25_s18  ;;  %s936_s20 = int_to_ptr.vmem [resolvable:$true] %s44_s20 }
  0x24   :  { %s773_s23 = scalar_lea.hbm %s1028_s0, 128 }
  0x25   :  { %p774_p2 = scmp.ne.s32.totalorder %s1028_s0, %s773_s23  ;;  %p777_p3 = scmp.lt.u32.totalorder %s773_s23, %s1028_s0 }
  0x27   :  { %p779_p4 = pnand %p777_p3, %p774_p2 }
  0x29   :  { %782 = shalt.err (!%p779_p4)
}
  0x2a   :  { %s783_s3 = scalar_lea.vmem %s26_s18, 128  ;;  %p788_p6 = scmp.lt.s32.totalorder %s26_s18, %s26_s18 }
  0x2b   :  { %p784_p5 = scmp.ne.s32.totalorder %s26_s18, %s783_s3  ;;  %p789_p7 = scmp.lt.s32.totalorder %s783_s3, %s783_s3 }
  0x2d   :  { %p790_p8 = por %p789_p7, %p788_p6 }
  0x2f   :  { %p791_p9 = pnand %p790_p8, %p784_p5 }
  0x31   :  { %794 = shalt.err (!%p791_p9)
}
  0x32   :  { %28 = dma.hbm_to_vmem [thread:$0]  %s1028_s0, 128, %s26_s18, [#allocation3]  }
  0x33   :  { %s795_s11 = scalar_lea.hbm %s1030_s2, 1792 }
  0x34   :  { %p796_p10 = scmp.ne.s32.totalorder %s1030_s2, %s795_s11  ;;  %p799_p11 = scmp.lt.u32.totalorder %s795_s11, %s1030_s2 }
  0x36   :  { %p801_p12 = pnand %p799_p11, %p796_p10 }
  0x38   :  { %804 = shalt.err (!%p801_p12)
}
  0x39   :  { %s805_s14 = scalar_lea.vmem %s936_s20, 1792  ;;  %p810_p0 = scmp.lt.s32.totalorder %s936_s20, %s936_s20 }
  0x3a   :  { %p806_p13 = scmp.ne.s32.totalorder %s936_s20, %s805_s14  ;;  %p811_p1 = scmp.lt.s32.totalorder %s805_s14, %s805_s14 }
  0x3c   :  { %p812_p2 = por %p811_p1, %p810_p0 }
  0x3e   :  { %p813_p3 = pnand %p812_p2, %p806_p13 }
  0x40   :  { %816 = shalt.err (!%p813_p3)
}
  0x41   :  { %s849_s0 = smov 256   ;;  %s850_s17 = smov 16  }
  0x42   :  { %50 = dma.hbm_to_vmem [thread:$0]  %s1030_s2, 1792, %s936_s20, [#allocation5], %s849_s0, %s849_s0, %s850_s17  }
  0x43   :  { %s851_s21 = smov [#allocation9]   ;;  %s817_s25 = scalar_lea.hbm %s1033_s5, 4096 }
  0x44   :  { %s68_s22 = sshll.u32 %s851_s21, 4  ;;  %p818_p4 = scmp.ne.s32.totalorder %s1033_s5, %s817_s25  ;;  %s69_s22 = int_to_ptr.vmem [resolvable:$true] %s68_s22 }
  0x45   :  { %p821_p5 = scmp.lt.u32.totalorder %s817_s25, %s1033_s5 }
  0x47   :  { %p823_p6 = pnand %p821_p5, %p818_p4 }
  0x49   :  { %826 = shalt.err (!%p823_p6)
}
  0x4a   :  { %s827_s28 = scalar_lea.vmem %s69_s22, 4096  ;;  %p832_p8 = scmp.lt.s32.totalorder %s69_s22, %s69_s22 }
  0x4b   :  { %p828_p7 = scmp.ne.s32.totalorder %s69_s22, %s827_s28  ;;  %p833_p9 = scmp.lt.s32.totalorder %s827_s28, %s827_s28 }
  0x4d   :  { %p834_p10 = por %p833_p9, %p832_p8 }
  0x4f   :  { %p835_p11 = pnand %p834_p10, %p828_p7 }
  0x51   :  { %838 = shalt.err (!%p835_p11)
}
  0x52   :  { %s852_s2 = smov 128   ;;  %s853_s20 = smov 8  }
  0x53   :  { %74 = dma.hbm_to_vmem [thread:$0]  %s1033_s5, 4096, %s69_s22, [#allocation8], %s852_s2, %s852_s2, %s853_s20  }
  0x54   :  { %839 = dma.done.wait [#allocation3], 128  }
  0x55   :  { %840 = vsyncadd [#allocation3], 4294967168 }
  0x56   :  { %841 = dma.done.wait [#allocation5], 1920  }
  0x57   :  { %842 = vsyncadd [#allocation5], 4294965376 }
  0x58   :  { %843 = dma.done.wait [#allocation8], 4352  }
  0x59   :  { %844 = vsyncadd [#allocation8], 4294962944  ;;  %v854_v0 = vmov 0.0   ;;  %v99_v1 = vld [vmem:[#allocation6 + $0x8] sm:$0xff]  ;;  %v101_v2 = vld [vmem:[#allocation6 + $0x18] sm:$0xff]  ;;  %vm118_vm0 = vcmask 1045504  }
  0x5a   :  { %189 = vmatprep.mubr.f32.mxu1 %v854_v0  ;;  %271 = vmatprep.mubr.f32.mxu0 %v854_v0  ;;  %v98_v3 = vld [vmem:[#allocation6] sm:$0xff]  ;;  %v655_v4 = vpack.c.bf16 %v101_v2, %v99_v1  ;;  %v100_v5 = vld [vmem:[#allocation6 + $0x10] sm:$0xff]  ;;  %v103_v6 = vld [vmem:[#allocation6 + $0x28] sm:$0xff]  ;;  %vm114_vm1 = vcmask 48128   ;;  %v855_v23 = vmov 0.0|0.0   ;;  %vm200_vm2 = vcmask 1041408  }
  0x5b   :  { %v105_v7 = vld [vmem:[#allocation6 + $0x38] sm:$0xff]  ;;  %v657_v8 = vpack.c.bf16 %v100_v5, %v98_v3  ;;  %v102_v10 = vld [vmem:[#allocation6 + $0x20] sm:$0xff]  ;;  %v104_v11 = vld [vmem:[#allocation6 + $0x30] sm:$0xff]  ;;  %vm196_vm3 = vcmask 408576   ;;  %vm856_vm4 = vmmov 0   ;;  %vm406_vm5 = vcmask 7168  }
  0x5c   :  { %v659_v9 = vpack.c.bf16 %v105_v7, %v103_v6  ;;  %v107_v12 = vld [vmem:[#allocation6 + $0x48] sm:$0xff]  ;;  %656 = vmatprep.subr.bf16.mxu0 %v655_v4  ;;  %v109_v13 = vld [vmem:[#allocation6 + $0x58] sm:$0xff]  ;;  %v661_v14 = vpack.c.bf16 %v104_v11, %v102_v10  ;;  %v112_v16 = vld [vmem:[#allocation7] sm:$0x3f]  ;;  %v280_v11 = vlaneseq }
  0x5d   :  { %658 = vmatpush1.bf16.msra.mxu0 %v657_v8  ;;  %v113_v15 = vld [vmem:[#allocation7 + $0x8] sm:$0x3f]  ;;  %v663_v17 = vpack.c.bf16 %v109_v13, %v107_v12  ;;  %v106_v18 = vld [vmem:[#allocation6 + $0x40] sm:$0xff]  ;;  %v108_v19 = vld [vmem:[#allocation6 + $0x50] sm:$0xff] }
  0x5e   :  { %660 = vmatprep.subr.bf16.mxu0 %v659_v9  ;;  %536 = vmatprep.subr.msk.mxu1 %vm118_vm0, %v113_v15  ;;  %v97_v20 = vld [vmem:[#allocation4] sm:$0xff]  ;;  %v294_v21 = vld [vmem:[#allocation9] sm:$0xff]  ;;  %v295_v22 = vld [vmem:[#allocation9 + $0x8] sm:$0xff]  ;;  %v665_v27 = vpack.c.bf16 %v108_v19, %v106_v18 }
  0x5f   :  { %537 = vmatpush1.msk.msra.mxu1 %vm118_vm0, %v112_v16  ;;  %v668_v24 = vpack.c.bf16 %v295_v22, %v294_v21  ;;  %v296_v25 = vld [vmem:[#allocation9 + $0x10] sm:$0xff]  ;;  %v297_v26 = vld [vmem:[#allocation9 + $0x18] sm:$0xff]  ;;  %v111_v29 = vld [vmem:[#allocation6 + $0x68] sm:$0x3] }
  0x60   :  { %538 = vmatmul.mubr.msk.f32.vlgmr.msra.gmra.mrb[0].mxu1 %vm114_vm1, %v97_v20  ;;  %667 = vmatprep.subr.bf16.mxu1 %v855_v23  ;;  %v671_v28 = vpack.c.bf16 %v297_v26, %v296_v25  ;;  %v409_v30 = vld [vmem:[#allocation9 + $0x80] sm:$0xff]  ;;  %v410_v31 = vld [vmem:[#allocation9 + $0x88] sm:$0xff]  ;;  %v96_v35 = vld [vmem:[#allocation2] sm:$0xff] }
  0x61   :  { %662 = vmatpush1.bf16.msra.mxu0 %v661_v14  ;;  %669 = vmatpush3.bf16.msra.mxu1 %v668_v24  ;;  %v298_v32 = vld [vmem:[#allocation9 + $0x20] sm:$0xff]  ;;  %v299_v33 = vld [vmem:[#allocation9 + $0x28] sm:$0xff]  ;;  %v692_v36 = vpack.c.bf16 %v410_v31, %v409_v30  ;;  %v411_v37 = vld [vmem:[#allocation9 + $0x90] sm:$0xff]  ;;  %v281_v14 = vshrl.u32 %v280_v11, 7 }
  0x62   :  { %664 = vmatprep.subr.bf16.mxu0 %v663_v17  ;;  %670 = vmatprep.subr.bf16.mxu1 %v855_v23  ;;  %v110_v34 = vld [vmem:[#allocation6 + $0x60] sm:$0x3]  ;;  %v674_v38 = vpack.c.bf16 %v299_v33, %v298_v32  ;;  %v412_v39 = vld [vmem:[#allocation9 + $0x98] sm:$0xff]  ;;  %v300_v40 = vld [vmem:[#allocation9 + $0x30] sm:$0xff] }
  0x63   :  { %v301_v41 = vld [vmem:[#allocation9 + $0x38] sm:$0xff]  ;;  %v695_v42 = vpack.c.bf16 %v412_v39, %v411_v37  ;;  %v413_v43 = vld [vmem:[#allocation9 + $0xa0] sm:$0xff]  ;;  %v414_v45 = vld [vmem:[#allocation9 + $0xa8] sm:$0xff]  ;;  %617 = vmatprep.mubr.msk.f32.mxu1 %vm856_vm4, %v854_v0  ;;  %v282_v15 = vsub.s32 0, %v281_v14  ;;  %v286_v17 = vsub.s32 1, %v281_v14 }
  0x64   :  { %v677_v44 = vpack.c.bf16 %v301_v41, %v300_v40  ;;  %v302_v46 = vld [vmem:[#allocation9 + $0x40] sm:$0xff]  ;;  %v303_v47 = vld [vmem:[#allocation9 + $0x48] sm:$0xff]  ;;  %v698_v48 = vpack.c.bf16 %v414_v45, %v413_v43  ;;  %v415_v49 = vld [vmem:[#allocation9 + $0xb0] sm:$0xff] }
  0x65   :  { %666 = vmatpush1.bf16.msra.mxu0 %v665_v27  ;;  %672 = vmatpush3.bf16.msra.mxu1 %v671_v28  ;;  %v680_v50 = vpack.c.bf16 %v303_v47, %v302_v46  ;;  %v416_v51 = vld [vmem:[#allocation9 + $0xb8] sm:$0xff]  ;;  %v304_v52 = vld [vmem:[#allocation9 + $0x50] sm:$0xff]  ;;  %v417_v56 = vld [vmem:[#allocation9 + $0xc0] sm:$0xff] }
  0x66   :  { %539 = vmatprep.subr.msk.mxu0 %vm200_vm2, %v111_v29  ;;  %673 = vmatprep.subr.bf16.mxu1 %v855_v23  ;;  %v305_v53 = vld [vmem:[#allocation9 + $0x58] sm:$0xff]  ;;  %v701_v54 = vpack.c.bf16 %v416_v51, %v415_v49  ;;  %v418_v57 = vld [vmem:[#allocation9 + $0xc8] sm:$0xff]  ;;  %v419_v59 = vld [vmem:[#allocation9 + $0xd0] sm:$0xff] }
  0x67   :  { %v683_v55 = vpack.c.bf16 %v305_v53, %v304_v52  ;;  %v704_v58 = vpack.c.bf16 %v418_v57, %v417_v56  ;;  %v420_v60 = vld [vmem:[#allocation9 + $0xd8] sm:$0xff]  ;;  %v306_v62 = vld [vmem:[#allocation9 + $0x60] sm:$0xff]  ;;  %v307_v63 = vld [vmem:[#allocation9 + $0x68] sm:$0xff] }
  0x68   :  { %v707_v61 = vpack.c.bf16 %v420_v60, %v419_v59  ;;  %v686_v1 = vpack.c.bf16 %v307_v63, %v306_v62  ;;  %v421_v2 = vld [vmem:[#allocation9 + $0xe0] sm:$0xff]  ;;  %v422_v3 = vld [vmem:[#allocation9 + $0xe8] sm:$0xff]  ;;  %v308_v5 = vld [vmem:[#allocation9 + $0x70] sm:$0xff] }
  0x69   :  { %540 = vmatpush1.msk.msra.mxu0 %vm200_vm2, %v110_v34  ;;  %675 = vmatpush3.bf16.msra.mxu1 %v674_v38  ;;  %v710_v4 = vpack.c.bf16 %v422_v3, %v421_v2  ;;  %v309_v6 = vld [vmem:[#allocation9 + $0x78] sm:$0xff]  ;;  %v423_v8 = vld [vmem:[#allocation9 + $0xf0] sm:$0xff] }
  0x6a   :  { %541 = vmatmul.mubr.msk.f32.vlgmr.msra.gmra.mrb[0].mxu0 %vm196_vm3, %v96_v35  ;;  %691 = vmatprep.subr.bf16.mxu0 %v855_v23  ;;  %v689_v7 = vpack.c.bf16 %v309_v6, %v308_v5  ;;  %v424_v9 = vld [vmem:[#allocation9 + $0xf8] sm:$0xff]  ;;  %v278_v16 = vld [vmem:[%s1032_s4] sm:$0x3] }
  0x6b   :  { %693 = vmatpush3.bf16.msra.mxu0 %v692_v36  ;;  %676 = vmatprep.subr.bf16.mxu1 %v855_v23  ;;  %v713_v10 = vpack.c.bf16 %v424_v9, %v423_v8  ;;  %v283_v18 = vrot.slane %v278_v16, %v282_v15  ;;  %v287_v20 = vrot.slane %v278_v16, %v286_v17  ;;  %v542_v27 = vld [vmem:[%s1034_s6] ss:$0 sm:$0xff]  ;;  %v546_v28 = vld [vmem:[%s1034_s6 + $0x1] ss:$0 sm:$0xff] }
  0x6c   :  { %694 = vmatprep.subr.bf16.mxu0 %v855_v23  ;;  %652 = vmatprep.mubr.msk.f32.mxu0 %vm856_vm4, %v854_v0  ;;  %v543_v35 = vld [vmem:[%s1035_s7] ss:$0 sm:$0xff]  ;;  %v548_v39 = vld [vmem:[%s1035_s7 + $0x1] ss:$0 sm:$0xff] }
  0x6d   :  { %678 = vmatpush3.bf16.msra.mxu1 %v677_v44  ;;  %v544_v41 = vld [vmem:[%s1036_s8] ss:$0 sm:$0xff]  ;;  %v550_v44 = vld [vmem:[%s1036_s8 + $0x1] ss:$0 sm:$0xff] }
  0x6e   :  { %679 = vmatprep.subr.bf16.mxu1 %v855_v23 }
  0x6f   :  { %696 = vmatpush3.bf16.msra.mxu0 %v695_v42 }
  0x70   :  { %697 = vmatprep.subr.bf16.mxu0 %v855_v23 }
  0x71   :  { %681 = vmatpush3.bf16.msra.mxu1 %v680_v50 }
  0x72   :  { %682 = vmatprep.subr.bf16.mxu1 %v855_v23 }
  0x73   :  { %699 = vmatpush3.bf16.msra.mxu0 %v698_v48 }
  0x74   :  { %700 = vmatprep.subr.bf16.mxu0 %v855_v23 }
  0x75   :  { %684 = vmatpush3.bf16.msra.mxu1 %v683_v55 }
  0x76   :  { %685 = vmatprep.subr.bf16.mxu1 %v855_v23 }
  0x77   :  { %702 = vmatpush3.bf16.msra.mxu0 %v701_v54 }
  0x78   :  { %703 = vmatprep.subr.bf16.mxu0 %v855_v23 }
  0x79   :  { %687 = vmatpush3.bf16.msra.mxu1 %v686_v1 }
  0x7a   :  { %688 = vmatprep.subr.bf16.mxu1 %v855_v23 }
  0x7b   :  { %705 = vmatpush3.bf16.msra.mxu0 %v704_v58 }
  0x7c   :  { %706 = vmatprep.subr.bf16.mxu0 %v855_v23 }
  0x7d   :  { %690 = vmatpush3.bf16.msra.mxu1 %v689_v7 }
  0x7f   :  { %708 = vmatpush3.bf16.msra.mxu0 %v707_v61 }
  0x80   :  { %709 = vmatprep.subr.bf16.mxu0 %v855_v23 }
  0x83   :  { %711 = vmatpush3.bf16.msra.mxu0 %v710_v4 }
  0x84   :  { %712 = vmatprep.subr.bf16.mxu0 %v855_v23 }
  0x87   :  { %714 = vmatpush3.bf16.msra.mxu0 %v713_v10 }
 0x133   :  { %v191_v12 = vpop.f32.mrb[0].mxu1 }
 0x134   :  { %v193_v13 = vpop.f32.mrb[1].mxu1 }
 0x13d   :  { %v273_v19 = vpop.f32.mrb[0].mxu0 }
 0x13e   :  { %v274_v21 = vadd.f32 %v273_v19, %v191_v12  ;;  %v275_v22 = vpop.f32.mrb[1].mxu0 }
 0x13f   :  { %v276_v23 = vadd.f32 %v275_v22, %v193_v13 }
 0x140   :  { %v290_v24 = vadd.f32 %v283_v18, %v274_v21 }
 0x141   :  { %v291_v25 = vadd.f32 %v287_v20, %v276_v23 }
 0x142   :  { %v292_v26 = vmax.f32 %v290_v24, 0.0 }
 0x143   :  { %v293_v0 = vmax.f32 %v291_v25, 0.0 }
 0x144   :  { %618 = vmatmul.mubr.f32.vlgmr.msra.gmra.mrb[2].mxu1 %v292_v26 }
 0x145   :  { %653 = vmatmul.mubr.f32.vlgmr.msra.gmra.mrb[2].mxu0 %v293_v0 }
 0x217   :  { %v383_v29 = vpop.f32.mrb[2].mxu1 }
 0x218   :  { %v384_v30 = vadd.f32 %v542_v27, %v383_v29  ;;  %v619_v31 = vpop.f32.mrb[3].mxu1  ;;  %v499_v32 = vpop.f32.mrb[2].mxu0 }
 0x219   :  { %v500_v33 = vadd.f32 %v546_v28, %v499_v32  ;;  %v654_v34 = vpop.f32.mrb[3].mxu0 }
 0x21a   :  { %v387_v36 = vmax.f32 %v384_v30, 0.0 }
 0x21b   :  { %v503_v37 = vmax.f32 %v500_v33, 0.0 }
 0x21c   :  { %v395_v38 = vmul.f32 %v543_v35, %v387_v36 }
 0x21d   :  { %v512_v40 = vmul.f32 %v548_v39, %v503_v37 }
 0x21e   :  { %396 = vadd.xlane.f32.xlu0 %v395_v38 }
 0x222   :  { %513 = vadd.xlane.f32.xlu0 %v512_v40 }
 0x2ab   :  { %v397_v42 = vpop.xlane.xlu0 %396 }
 0x2ac   :  { %v405_v43 = vadd.f32 %v544_v41, %v397_v42 }
 0x2ae   :  { %407 = vst.msk [vmem:[%s1037_s9] sm:$0xff] %vm406_vm5, %v405_v43 }
 0x2af   :  { %v514_v45 = vpop.xlane.xlu0 %513 }
 0x2b0   :  { %v523_v46 = vadd.f32 %v550_v44, %v514_v45 }
 0x2b2   :  { %524 = vst.msk [vmem:[%s1038_s10] sm:$0xff] %vm406_vm5, %v523_v46 }
 0x2b3   :  { %533 = vsyncpa [#allocation3], 1 }
 0x2b4   :  { %534 = vsyncpa [#allocation5], 1 }
 0x2b5   :  { %535 = vsyncpa [#allocation8], 1 }

</bundles_post_ra>
